<compile_context>
chip_gen: v7x
topology: tpu7x:2x2x1
jax: 0.10.0
libtpu: 0.0.40
codegen_flags: <defaults>
</compile_context>

<pallas_src>
import functools

import jax
import jax.numpy as jnp
from jax.experimental import pallas as pl
from jax.experimental.pallas import tpu as pltpu


def _adv_head_kernel(x_ref, w1_ref, b1_ref, w2_ref, b2_ref, o_ref):
    # x_ref : (TB, H)        batch tile (shared features)
    # w1_ref: (H, A*M)       pre-transposed layer-1 weights, heads on lanes
    # b1_ref: (1, A*M)
    # w2_ref: (A*M, A*L)     block-diagonal pre-transposed layer-2 weights
    # b2_ref: (1, A*L)
    # o_ref : (TB, A*L)      lane-dense output, heads concatenated on lanes
    #
    # TODO(synk): training-mode dropout and the gradient-reversal backward of
    # ReverseLayerF are not part of this forward kernel.
    x = x_ref[...]
    h = jnp.tanh(
        jnp.dot(x, w1_ref[...], preferred_element_type=jnp.float32)
        + b1_ref[...].astype(jnp.float32))
    out = (jnp.dot(h.astype(w2_ref.dtype), w2_ref[...],
                   preferred_element_type=jnp.float32)
           + b2_ref[...].astype(jnp.float32))
    o_ref[...] = out.astype(o_ref.dtype)


@functools.partial(jax.jit, static_argnames=("block_b",))
def adv_head_forward_packed(x, w1t, b1f, w2bd, b2f, block_b=None):
    """Fused forward over all heads.

    x    : (B, H)
    w1t  : (H, A*M)    b1f : (1, A*M)
    w2bd : (A*M, A*L)  b2f : (1, A*L)
    returns (B, A*L) float32 (heads concatenated along the last axis).
    """
    B, H = x.shape
    AM = w1t.shape[1]
    AL = w2bd.shape[1]

    if block_b is None:
        block_b = B if B <= 512 else 512
    if B % block_b != 0:           # small / ragged batch: single tile
        block_b = B
    grid_b = B // block_b

    out = pl.pallas_call(
        _adv_head_kernel,
        out_shape=jax.ShapeDtypeStruct((B, AL), jnp.float32),
        grid_spec=pltpu.PrefetchScalarGridSpec(
            num_scalar_prefetch=0,
            grid=(grid_b,),
            in_specs=[
                pl.BlockSpec((block_b, H), lambda b: (b, 0)),  # x batch tile
                pl.BlockSpec((H, AM), lambda b: (0, 0)),       # W1t (shared)
                pl.BlockSpec((1, AM), lambda b: (0, 0)),       # b1
                pl.BlockSpec((AM, AL), lambda b: (0, 0)),      # W2 block-diag
                pl.BlockSpec((1, AL), lambda b: (0, 0)),       # b2
            ],
            out_specs=pl.BlockSpec((block_b, AL), lambda b: (b, 0)),
        ),
        compiler_params=pltpu.CompilerParams(
            dimension_semantics=("parallel",)),
    )(x, w1t, b1f, w2bd, b2f)
    return out


def pack_params(params, matmul_dtype=None):
    """One-time host-side packing of per-head PyTorch-layout parameters.

    params: w1 (A, M, H), b1 (A, 1, M), w2 (A, L, M), b2 (A, 1, L)
    """
    w1, b1, w2, b2 = params["w1"], params["b1"], params["w2"], params["b2"]
    A, M, H = w1.shape
    L = w2.shape[1]

    # Layer 1: pre-transpose and concatenate heads along the lane axis.
    w1t = jnp.transpose(w1, (2, 0, 1)).reshape(H, A * M)       # (H, A*M)
    b1f = b1.reshape(1, A * M)

    # Layer 2: block-diagonal so head a maps h[:, a*M:(a+1)*M] to
    # out[:, a*L:(a+1)*L] with zero cross-head blocks.
    w2t = jnp.transpose(w2, (0, 2, 1))                          # (A, M, L)
    w2bd = jnp.zeros((A * M, A * L), w2.dtype)
    for a in range(A):
        w2bd = w2bd.at[a * M:(a + 1) * M, a * L:(a + 1) * L].set(w2t[a])
    b2f = b2.reshape(1, A * L)

    if matmul_dtype is not None:
        # bf16 MXU operands on v6e/v7x; bias / tanh / accumulation stay f32
        # inside the kernel (preferred_element_type=f32).
        w1t = w1t.astype(matmul_dtype)
        w2bd = w2bd.astype(matmul_dtype)

    return {"w1t": w1t, "b1f": b1f, "w2bd": w2bd, "b2f": b2f,
            "adv_count": A, "num_labels": L}


def adv_head_apply(x, packed, matmul_dtype=None):
    """Mirrors AdvHead.forward: returns a Python list of per-head outputs."""
    A, L = packed["adv_count"], packed["num_labels"]
    xm = x.astype(matmul_dtype) if matmul_dtype is not None else x
    stacked = adv_head_forward_packed(xm, packed["w1t"], packed["b1f"],
                                      packed["w2bd"], packed["b2f"])
    return [stacked[:, a * L:(a + 1) * L] for a in range(A)]


def adv_head_apply_reverse(x, packed, lmbda=1.0, matmul_dtype=None):
    """Mirrors AdvHead.forward_reverse: forward pass identical to forward
    (gradient reversal only changes the backward pass)."""
    del lmbda
    return adv_head_apply(x, packed, matmul_dtype)


def init_params(key, adv_count, hid_sizes, num_labels, dtype=jnp.float32):
    """Deterministic synthetic init, PyTorch Linear layout, hid_sizes=[H, M]."""
    H, M = hid_sizes
    L = num_labels
    k1, k2, k3, k4 = jax.random.split(key, 4)
    scale1 = 1.0 / jnp.sqrt(jnp.asarray(H, dtype))
    scale2 = 1.0 / jnp.sqrt(jnp.asarray(M, dtype))
    return {
        "w1": jax.random.uniform(k1, (adv_count, M, H), dtype, -scale1, scale1),
        "b1": jax.random.uniform(k2, (adv_count, 1, M), dtype, -scale1, scale1),
        "w2": jax.random.uniform(k3, (adv_count, L, M), dtype, -scale2, scale2),
        "b2": jax.random.uniform(k4, (adv_count, 1, L), dtype, -scale2, scale2),
    }


def _reference(x, params):
    """Plain-JAX reference of the same forward pass (per-head loop)."""
    outs = []
    for a in range(params["w1"].shape[0]):
        h = jnp.tanh(x @ params["w1"][a].T + params["b1"][a])
        outs.append(h @ params["w2"][a].T + params["b2"][a])
    return outs


if __name__ == "__main__":
    ADV_COUNT = 2
    HID_SIZES = [32, 16]      # ClfHead(hid_sizes=[32, 16], num_labels=3)
    NUM_LABELS = 3
    BATCH = 8

    key = jax.random.PRNGKey(0)
    kx, kp = jax.random.split(key)
    x = jax.random.normal(kx, (BATCH, HID_SIZES[0]), jnp.float32)
    params = init_params(kp, ADV_COUNT, HID_SIZES, NUM_LABELS)

    packed = pack_params(params)          # f32 path keeps 1e-5 tolerance
    outs = adv_head_apply(x, packed)
    outs = [jax.block_until_ready(o) for o in outs]

    refs = _reference(x, params)
    for o, r in zip(outs, refs):
        assert o.shape == (BATCH, NUM_LABELS)
        assert jnp.allclose(o, r, atol=1e-5, rtol=1e-5)

    # forward_reverse has an identical forward pass.
    outs_rev = adv_head_apply_reverse(x, packed, lmbda=1.0)
    outs_rev = [jax.block_until_ready(o) for o in outs_rev]
    for o, r in zip(outs_rev, refs):
        assert jnp.allclose(o, r, atol=1e-5, rtol=1e-5)

    print("KERNEL_OK")
</pallas_src>

<mosaic_0001>
module attributes {stable_mosaic.version = 11 : i64} {
  func.func @_adv_head_kernel(%arg0: i32, %arg1: memref<8x32xf32, #tpu.memory_space<vmem>>, %arg2: memref<32x32xf32, #tpu.memory_space<vmem>>, %arg3: memref<1x32xf32, #tpu.memory_space<vmem>>, %arg4: memref<32x6xf32, #tpu.memory_space<vmem>>, %arg5: memref<1x6xf32, #tpu.memory_space<vmem>>, %arg6: memref<8x6xf32, #tpu.memory_space<vmem>>) attributes {dimension_semantics = [#tpu.dimension_semantics<parallel>], iteration_bounds = array<i64: 1>, scalar_prefetch = 0 : i64, scratch_operands = 0 : i64, tpu.core_type = #tpu.core_type<tc>, window_params = [{transform_indices = @transform_0, window_bounds = array<i64: 8, 32>}, {pipeline_mode = #tpu.pipeline_mode<synchronous>, transform_indices = @transform_1, window_bounds = array<i64: 32, 32>}, {pipeline_mode = #tpu.pipeline_mode<synchronous>, transform_indices = @transform_2, window_bounds = array<i64: 1, 32>}, {pipeline_mode = #tpu.pipeline_mode<synchronous>, transform_indices = @transform_3, window_bounds = array<i64: 32, 6>}, {pipeline_mode = #tpu.pipeline_mode<synchronous>, transform_indices = @transform_4, window_bounds = array<i64: 1, 6>}, {transform_indices = @transform_5, window_bounds = array<i64: 8, 6>}]} {
    %c0 = arith.constant 0 : index
    %c0_0 = arith.constant 0 : index
    %0 = vector.load %arg1[%c0, %c0_0] : memref<8x32xf32, #tpu.memory_space<vmem>>, vector<8x32xf32>
    %c0_1 = arith.constant 0 : index
    %c0_2 = arith.constant 0 : index
    %1 = vector.load %arg2[%c0_1, %c0_2] : memref<32x32xf32, #tpu.memory_space<vmem>>, vector<32x32xf32>
    %cst = arith.constant dense<0.000000e+00> : vector<8x32xf32>
    %2 = tpu.matmul %0, %1, %cst {dimension_numbers = #tpu.dot_dimension_numbers<[1], [0], [0], [1], [0, 0, 1, 1], [], []>} : vector<8x32xf32>, vector<32x32xf32>, vector<8x32xf32> -> vector<8x32xf32>
    %c0_3 = arith.constant 0 : index
    %c0_4 = arith.constant 0 : index
    %3 = vector.load %arg3[%c0_3, %c0_4] : memref<1x32xf32, #tpu.memory_space<vmem>>, vector<1x32xf32>
    %4 = vector.broadcast %3 : vector<1x32xf32> to vector<8x32xf32>
    %5 = arith.addf %2, %4 : vector<8x32xf32>
    %6 = math.tanh %5 : vector<8x32xf32>
    %c0_5 = arith.constant 0 : index
    %c0_6 = arith.constant 0 : index
    %7 = vector.load %arg4[%c0_5, %c0_6] : memref<32x6xf32, #tpu.memory_space<vmem>>, vector<32x6xf32>
    %cst_7 = arith.constant dense<0.000000e+00> : vector<8x6xf32>
    %8 = tpu.matmul %6, %7, %cst_7 {dimension_numbers = #tpu.dot_dimension_numbers<[1], [0], [0], [1], [0, 0, 1, 1], [], []>} : vector<8x32xf32>, vector<32x6xf32>, vector<8x6xf32> -> vector<8x6xf32>
    %c0_8 = arith.constant 0 : index
    %c0_9 = arith.constant 0 : index
    %9 = vector.load %arg5[%c0_8, %c0_9] : memref<1x6xf32, #tpu.memory_space<vmem>>, vector<1x6xf32>
    %10 = vector.broadcast %9 : vector<1x6xf32> to vector<8x6xf32>
    %11 = arith.addf %8, %10 : vector<8x6xf32>
    %c0_10 = arith.constant 0 : index
    %c0_11 = arith.constant 0 : index
    %12 = vector.load %arg6[%c0_10, %c0_11] : memref<8x6xf32, #tpu.memory_space<vmem>>, vector<8x6xf32>
    tpu.vector_store %arg6[%c0_10, %c0_11], %11 {strides = array<i32>} : memref<8x6xf32, #tpu.memory_space<vmem>>, vector<8x6xf32>,
    return
  }
  func.func @transform_0(%arg0: i32) -> (i32, i32) {
    %c0_i32 = arith.constant 0 : i32
    %c0_i32_0 = arith.constant 0 : i32
    return %arg0, %c0_i32 : i32, i32
  }
  func.func @transform_1(%arg0: i32) -> (i32, i32) {
    %c0_i32 = arith.constant 0 : i32
    %c0_i32_0 = arith.constant 0 : i32
    %c0_i32_1 = arith.constant 0 : i32
    return %c0_i32, %c0_i32_0 : i32, i32
  }
  func.func @transform_2(%arg0: i32) -> (i32, i32) {
    %c0_i32 = arith.constant 0 : i32
    %c0_i32_0 = arith.constant 0 : i32
    %c0_i32_1 = arith.constant 0 : i32
    return %c0_i32, %c0_i32_0 : i32, i32
  }
  func.func @transform_3(%arg0: i32) -> (i32, i32) {
    %c0_i32 = arith.constant 0 : i32
    %c0_i32_0 = arith.constant 0 : i32
    %c0_i32_1 = arith.constant 0 : i32
    return %c0_i32, %c0_i32_0 : i32, i32
  }
  func.func @transform_4(%arg0: i32) -> (i32, i32) {
    %c0_i32 = arith.constant 0 : i32
    %c0_i32_0 = arith.constant 0 : i32
    %c0_i32_1 = arith.constant 0 : i32
    return %c0_i32, %c0_i32_0 : i32, i32
  }
  func.func @transform_5(%arg0: i32) -> (i32, i32) {
    %c0_i32 = arith.constant 0 : i32
    %c0_i32_0 = arith.constant 0 : i32
    return %arg0, %c0_i32 : i32, i32
  }
}

</mosaic_0001>

<bundles_post_ra>
// kernel: adv_head_forward_packed.1
= control target key start
LH: loop header
LB: loop body
LE: loop exit
PB: predicated region body
PF: predicated region fallthrough
CT: control target
= control target key end

     0   :  { %v286_v3 = vmov 0.0|0.0   ;;  %vm287_vm0 = vmmov 0   ;;  %v288_v6 = vmov 0.0   ;;  %s367_s0 = inlined_call_operand.vmem [shape: f32[8,32], index: 0, kind: input, shape index: {}]   ;;  %s368_s1 = inlined_call_operand.vmem [shape: f32[32,32], index: 1, kind: input, shape index: {}]   ;;  %s369_s2 = inlined_call_operand.vmem [shape: f32[1,32], index: 2, kind: input, shape index: {}]   ;;  %s370_s3 = inlined_call_operand.vmem [shape: f32[32,6], index: 3, kind: input, shape index: {}]   ;;  %s371_s4 = inlined_call_operand.vmem [shape: f32[1,6], index: 4, kind: input, shape index: {}]   ;;  %s372_s5 = inlined_call_operand.hbm [shape: f32[8,6], index: 5, kind: output, shape index: {}]  }
   0x1   :  { %v22_v0 = vld [vmem:[%s368_s1] sm:$0xff]  ;;  %v23_v1 = vld [vmem:[%s368_s1 + $0x8] sm:$0xff]  ;;  %v24_v2 = vld [vmem:[%s368_s1 + $0x10] sm:$0xff]  ;;  %244 = vmatprep.subr.bf16.mxu0 %v286_v3  ;;  %230 = vmatprep.mubr.msk.f32.mxu0 %vm287_vm0, %v288_v6 }
   0x2   :  { %v245_v4 = vpack.c.bf16 %v23_v1, %v22_v0  ;;  %v25_v5 = vld [vmem:[%s368_s1 + $0x18] sm:$0xff]  ;;  %250 = vmatprep.subr.bf16.mxu1 %v286_v3  ;;  %241 = vmatprep.mubr.msk.f32.mxu1 %vm287_vm0, %v288_v6 }
   0x3   :  { %10 = vsyncpa [#allocation3], 0  ;;  %v248_v7 = vpack.c.bf16 %v25_v5, %v24_v2  ;;  %v21_v8 = vld [vmem:[%s367_s0] sm:$0xff]  ;;  %vm33_vm1 = vcmask 261120   ;;  %v109_v10 = vld [vmem:[%s370_s3 + $0x8] sm:$0xff]  ;;  %vm192_vm2 = vcmask 48128  }
   0x4   :  { %246 = vmatpush3.bf16.msra.mxu0 %v245_v4  ;;  %v108_v9 = vld [vmem:[%s370_s3] sm:$0xff]  ;;  %v110_v11 = vld [vmem:[%s370_s3 + $0x10] sm:$0xff]  ;;  %v111_v13 = vld [vmem:[%s370_s3 + $0x18] sm:$0xff]  ;;  %s289_s3 = smov [#allocation2]  }
   0x5   :  { %247 = vmatprep.subr.bf16.mxu0 %v286_v3  ;;  %v251_v12 = vpack.c.bf16 %v109_v10, %v108_v9  ;;  %v254_v14 = vpack.c.bf16 %v111_v13, %v110_v11  ;;  %v208_v15 = vld [vmem:[%s369_s2] ss:$0 sm:$0xff]  ;;  %s200_s13 = sshll.u32 %s289_s3, 4  ;;  %s201_s13 = int_to_ptr.vmem [resolvable:$true] %s200_s13 }
   0x6   :  { %v210_v20 = vld [vmem:[%s371_s4] ss:$0 sm:$0xff]  ;;  %s262_s2 = scalar_lea.vmem %s201_s13, 128  ;;  %p267_p1 = scmp.lt.s32.totalorder %s201_s13, %s201_s13 }
   0x7   :  { %252 = vmatpush3.bf16.msra.mxu1 %v251_v12  ;;  %p263_p0 = scmp.ne.s32.totalorder %s201_s13, %s262_s2  ;;  %p268_p2 = scmp.lt.s32.totalorder %s262_s2, %s262_s2 }
   0x8   :  { %249 = vmatpush3.bf16.msra.mxu0 %v248_v7  ;;  %253 = vmatprep.subr.bf16.mxu1 %v286_v3 }
   0x9   :  { %p269_p3 = por %p268_p2, %p267_p1 }
   0xb   :  { %231 = vmatmul.mubr.msk.f32.vlgmr.msra.gmra.mrb[0].mxu0 %vm33_vm1, %v21_v8  ;;  %255 = vmatpush3.bf16.msra.mxu1 %v254_v14  ;;  %p270_p4 = pnand %p269_p3, %p263_p0 }
  0xde   :  { %v103_v16 = vpop.f32.mrb[0].mxu0 }
  0xdf   :  { %v104_v17 = vadd.f32 %v208_v15, %v103_v16  ;;  %v232_v18 = vpop.f32.mrb[1].mxu0 }
  0xe1   :  { %260 = vtanh.f32 %v104_v17 }
  0xeb   :  { %v261_v19 = vpop.eup %260 }
  0xec   :  { %242 = vmatmul.mubr.msk.f32.vlgmr.msra.gmra.mrb[0].mxu1 %vm33_vm1, %v261_v19 }
 0x1bf   :  { %v188_v21 = vpop.f32.mrb[0].mxu1 }
 0x1c0   :  { %v189_v22 = vadd.f32 %v210_v20, %v188_v21  ;;  %v243_v23 = vpop.f32.mrb[1].mxu1 }
 0x1c2   :  { %193 = vst.msk [vmem:[#allocation2] sm:$0xff] %vm192_vm2, %v189_v22 }
 0x1c3   :  { %273 = shalt.err (!%p270_p4)
}
 0x1c4   :  { %s274_s16 = scalar_lea.hbm %s372_s5, 128 }
 0x1c5   :  { %p275_p5 = scmp.ne.s32.totalorder %s372_s5, %s274_s16  ;;  %p278_p6 = scmp.lt.u32.totalorder %s274_s16, %s372_s5 }
 0x1c7   :  { %p280_p7 = pnand %p278_p6, %p275_p5 }
 0x1c9   :  { %283 = shalt.err (!%p280_p7)
}
 0x1ca   :  { %203 = dma.vmem_to_hbm [thread:$0]  %s201_s13, 128, %s372_s5, [#allocation3]  }
 0x1cb   :  { %284 = dma.done.wait [#allocation3], 128  }
 0x1cc   :  { %285 = vsyncadd [#allocation3], 4294967168 }
 0x1cd   :  { %207 = vsyncpa [#allocation3], 1 }

</bundles_post_ra>
